<compile_context>
chip_gen: v7x
topology: tpu7x:2x2x1
jax: 0.10.0
libtpu: 0.0.40
codegen_flags: <defaults>
</compile_context>

<pallas_src>
import functools

import jax
import jax.numpy as jnp
from jax.experimental import pallas as pl
from jax.experimental.pallas import tpu as pltpu


_MIB = 1024 * 1024
_TM_MAX = 2048                 # rows of X per grid step, upper cap
_LANE_DENSE_MAX_F = 256        # below this, (tm, 1) stores rival the X DMA

# Memoized per-shape kernel configuration: (lane_dense, semantics, precision).
_CONFIG_CACHE = {}


# ----------------------------------------------------------------------------
# Sizing helpers
# ----------------------------------------------------------------------------
def _vmem_capacity_bytes():
    """Physical VMEM of this generation (conservative 64 MiB if unknown)."""
    try:
        return int(pltpu.get_tpu_info().vmem_capacity_bytes)
    except Exception:
        return 64 * _MIB


def _x_budget_bytes(vmem_cap):
    # Double-buffered X-tile budget.  >=512-1024-row tiles are needed to sit
    # near the HBM roofline; 128-MiB parts afford ~40 MiB, v7x (64 MiB) ~20.
    return 40 * _MIB if vmem_cap >= 100 * _MIB else 20 * _MIB


def _choose_tm(n_rows, n_features, itemsize, budget):
    """Row tile: as large as the budget allows, multiple of 8, <= problem."""
    tm = budget // (2 * n_features * itemsize)      # 2x = double buffering
    tm = max(8, min(tm, _TM_MAX))
    tm -= tm % 8
    n_pad8 = ((n_rows + 7) // 8) * 8
    return max(8, min(tm, n_pad8))


def _vmem_limit_bytes(tm, n_features, itemsize, lane_dense, vmem_cap):
    f_pad = max(8, ((n_features + 7) // 8) * 8)
    x_bytes = 2 * tm * n_features * itemsize        # double-buffered X tiles
    w_bytes = 2 * f_pad * 128 * itemsize            # (F, 1) lane-padded to (F, 128)
    if lane_dense:
        o_bytes = 2 * 8 * tm * 4                    # (1, 1, tm) sublane-padded
    else:
        o_bytes = 2 * tm * 128 * 4                  # (tm, 1) lane-padded
    need = x_bytes + w_bytes + o_bytes + 4 * _MIB   # + compiler scratch margin
    cap = 96 * _MIB if vmem_cap >= 100 * _MIB else 48 * _MIB
    return int(min(max(need, 16 * _MIB), cap))


# ----------------------------------------------------------------------------
# Kernels
# ----------------------------------------------------------------------------
def _nlr_kernel_col(x_ref, w_ref, b_ref, o_ref, *, precision):
    # x_ref: (TM, F) input tile; w_ref: (F, 1) weight column;
    # b_ref: (1, 1) SMEM scalar bias; o_ref: (TM, 1) output column.
    logits = jnp.dot(x_ref[...], w_ref[...],
                     preferred_element_type=jnp.float32,
                     precision=precision) + b_ref[0, 0]
    o_ref[...] = jax.nn.sigmoid(logits).astype(o_ref.dtype)


def _nlr_kernel_row(x_ref, w_ref, b_ref, o_ref, *, precision):
    # Same math; the (TM, 1) MXU result is relaid out to a lane-dense (1, TM)
    # row (tm*4 bytes of XLU work per multi-MiB X tile) so the store and the
    # writeback DMA are dense instead of tm/8 masked vst.msk + 4-byte strides.
    logits = jnp.dot(x_ref[...], w_ref[...],
                     preferred_element_type=jnp.float32,
                     precision=precision) + b_ref[0, 0]
    o_ref[0] = jnp.transpose(jax.nn.sigmoid(logits)).astype(o_ref.dtype)


# ----------------------------------------------------------------------------
# pallas_call wrapper
# ----------------------------------------------------------------------------
def _forward_call(x, w_col, b, *, n_rows, n_features, tm, lane_dense,
                  semantics, precision, vmem_cap):
    grid = (pl.cdiv(n_rows, tm),)
    itemsize = jnp.dtype(x.dtype).itemsize
    in_specs = [
        pl.BlockSpec((tm, n_features), lambda i: (i, 0)),       # X row tile
        pl.BlockSpec((n_features, 1), lambda i: (0, 0)),        # weight column (replicated)
        pl.BlockSpec((1, 1), lambda i: (0, 0),
                     memory_space=pltpu.MemorySpace.SMEM),      # scalar bias
    ]
    compiler_params = pltpu.CompilerParams(
        dimension_semantics=semantics,
        vmem_limit_bytes=_vmem_limit_bytes(tm, n_features, itemsize,
                                           lane_dense, vmem_cap),
    )

    if lane_dense:
        n_tiles = grid[0]
        out = pl.pallas_call(
            functools.partial(_nlr_kernel_row, precision=precision),
            out_shape=jax.ShapeDtypeStruct((n_tiles, 1, tm), jnp.float32),
            grid_spec=pltpu.PrefetchScalarGridSpec(
                num_scalar_prefetch=0,
                grid=grid,
                in_specs=in_specs,
                out_specs=pl.BlockSpec((1, 1, tm), lambda i: (i, 0, 0)),
            ),
            compiler_params=compiler_params,
        )(x, w_col, b)
        # (n_tiles, 1, tm) -> (N, 1): layout plumbing over the tiny output;
        # ragged-last-tile garbage rows are sliced off here.
        return out.reshape(n_tiles * tm, 1)[:n_rows]

    return pl.pallas_call(
        functools.partial(_nlr_kernel_col, precision=precision),
        out_shape=jax.ShapeDtypeStruct((n_rows, 1), jnp.float32),
        grid_spec=pltpu.PrefetchScalarGridSpec(
            num_scalar_prefetch=0,
            grid=grid,
            in_specs=in_specs,
            out_specs=pl.BlockSpec((tm, 1), lambda i: (i, 0)),
        ),
        compiler_params=compiler_params,
    )(x, w_col, b)


def network_logistic_regression_forward(x, weight, bias, *, tm=None):
    """sigmoid(x @ weight.T + bias) as a Pallas TPU kernel.

    x:      (N, F) float array (float32 or bfloat16, streamed in native dtype)
    weight: (1, F) or (F,) array    (nn.Linear(n_features, 1).weight)
    bias:   (1,) or scalar array    (nn.Linear(n_features, 1).bias)
    returns (N, 1) float32
    """
    n_rows, n_features = x.shape
    if x.dtype not in (jnp.float32, jnp.bfloat16):
        x = x.astype(jnp.float32)
    # Weight/bias are O(F) bytes; reshaping/casting them costs nothing vs. X.
    w_col = jnp.asarray(weight).reshape(n_features, 1).astype(x.dtype)
    b = jnp.asarray(bias, jnp.float32).reshape(1, 1)

    vmem_cap = _vmem_capacity_bytes()
    itemsize = jnp.dtype(x.dtype).itemsize
    if tm is None:
        tm = _choose_tm(n_rows, n_features, itemsize, _x_budget_bytes(vmem_cap))
    tm = max(8, tm - tm % 8)
    n_steps = pl.cdiv(n_rows, tm)

    key = (n_rows, n_features, str(x.dtype), tm)
    cached = _CONFIG_CACHE.get(key)
    if cached is not None:
        lane_dense, semantics, precision = cached
        return _forward_call(x, w_col, b, n_rows=n_rows, n_features=n_features,
                             tm=tm, lane_dense=lane_dense, semantics=semantics,
                             precision=precision, vmem_cap=vmem_cap)

    # One-time (per shape) configuration probe, in preference order:
    #   * lane-dense (1, tm) output blocks when F is small enough that the
    #     (tm, 1) masked stores would rival the X DMA;
    #   * CORE_PARALLEL on the presumed-v7x 64-MiB 2-TensorCore part;
    #   * Precision.HIGHEST so f32 keeps ~f32 accuracy on the MXU.
    # Each of these is the kind of construct an older Mosaic may reject, so we
    # fall back config-by-config and memoize the winner (zero steady-state
    # cost; the fallback (tm, 1)-column / "parallel" / default-precision
    # configuration always lowers).
    lane_opts = [True, False] if n_features <= _LANE_DENSE_MAX_F else [False]
    if n_steps > 1 and vmem_cap <= 96 * _MIB:
        sem_opts = [(pltpu.CORE_PARALLEL,), ("parallel",)]
    else:
        sem_opts = [("parallel",)]
    prec_opts = [jax.lax.Precision.HIGHEST, None]

    last_err = None
    for lane_dense in lane_opts:
        for semantics in sem_opts:
            for precision in prec_opts:
                try:
                    out = _forward_call(
                        x, w_col, b, n_rows=n_rows, n_features=n_features,
                        tm=tm, lane_dense=lane_dense, semantics=semantics,
                        precision=precision, vmem_cap=vmem_cap)
                    _CONFIG_CACHE[key] = (lane_dense, semantics, precision)
                    return out
                except Exception as err:   # Mosaic rejection -> next config
                    last_err = err
    raise last_err


# ----------------------------------------------------------------------------
# Pure-JAX reference (exact f32 multiply-sum, no MXU precision ambiguity)
# ----------------------------------------------------------------------------
def network_logistic_regression_ref(x, weight, bias):
    w = jnp.asarray(weight, jnp.float32).reshape(1, x.shape[1])
    b = jnp.asarray(bias, jnp.float32).reshape(1,)
    logits = jnp.sum(x.astype(jnp.float32) * w, axis=1, keepdims=True) + b[None, :]
    return jax.nn.sigmoid(logits)


if __name__ == "__main__":
    key = jax.random.PRNGKey(0)
    kx, kw, kb, kx2, kx3 = jax.random.split(key, 5)

    # Tolerance is sized for the least-precise fallback config (a single
    # bf16-pass f32 MXU matmul); with Precision.HIGHEST honored the actual
    # error is ~1e-6 on these sigmoid outputs.
    ATOL, RTOL = 2e-3, 2e-3

    # Case 1: small shapes consistent with the module (batch=16, n_features=32)
    # -> single grid step, lane-dense output path.
    N, F = 16, 32
    x = jax.random.normal(kx, (N, F), dtype=jnp.float32)
    bound = 1.0 / float(F) ** 0.5
    weight = jax.random.uniform(kw, (1, F), minval=-bound, maxval=bound,
                                dtype=jnp.float32)
    bias = jax.random.uniform(kb, (1,), minval=-bound, maxval=bound,
                              dtype=jnp.float32)
    out = jax.block_until_ready(
        network_logistic_regression_forward(x, weight, bias))
    ref = network_logistic_regression_ref(x, weight, bias)
    assert out.shape == (N, 1)
    assert jnp.allclose(out, ref, atol=ATOL, rtol=RTOL), "mismatch (case 1)"

    # Case 2: multi-step ragged grid (N not a multiple of the row tile),
    # lane-dense output path.
    N2, F2 = 1000, 256
    x2 = jax.random.normal(kx2, (N2, F2), dtype=jnp.float32)
    bound2 = 1.0 / float(F2) ** 0.5
    w2 = jax.random.uniform(kw, (1, F2), minval=-bound2, maxval=bound2,
                            dtype=jnp.float32)
    b2 = jax.random.uniform(kb, (1,), minval=-bound2, maxval=bound2,
                            dtype=jnp.float32)
    out2 = jax.block_until_ready(
        network_logistic_regression_forward(x2, w2, b2, tm=128))
    ref2 = network_logistic_regression_ref(x2, w2, b2)
    assert out2.shape == (N2, 1)
    assert jnp.allclose(out2, ref2, atol=ATOL, rtol=RTOL), "mismatch (case 2)"

    # Case 3: larger feature count -> (tm, 1) column-output path.
    N3, F3 = 96, 512
    x3 = jax.random.normal(kx3, (N3, F3), dtype=jnp.float32)
    bound3 = 1.0 / float(F3) ** 0.5
    w3 = jax.random.uniform(kw, (F3,), minval=-bound3, maxval=bound3,
                            dtype=jnp.float32)
    b3 = jax.random.uniform(kb, (1,), minval=-bound3, maxval=bound3,
                            dtype=jnp.float32)
    out3 = jax.block_until_ready(
        network_logistic_regression_forward(x3, w3, b3))
    ref3 = network_logistic_regression_ref(x3, w3, b3)
    assert out3.shape == (N3, 1)
    assert jnp.allclose(out3, ref3, atol=ATOL, rtol=RTOL), "mismatch (case 3)"

    # TODO(synk): loss() (BCE + L1 + sparse Laplacian penalty) is training-only
    # and not part of forward(); not implemented as a kernel.
    print("KERNEL_OK")
</pallas_src>

<mosaic_0001>
module attributes {stable_mosaic.version = 11 : i64} {
  func.func @_nlr_kernel_row(%arg0: i32, %arg1: memref<16x32xf32, #tpu.memory_space<vmem>>, %arg2: memref<32x1xf32, #tpu.memory_space<vmem>>, %arg3: memref<1x1xf32, #tpu.memory_space<smem>>, %arg4: memref<1x1x16xf32, #tpu.memory_space<vmem>>) attributes {dimension_semantics = [#tpu.dimension_semantics<parallel>], iteration_bounds = array<i64: 1>, scalar_prefetch = 0 : i64, scratch_operands = 0 : i64, tpu.core_type = #tpu.core_type<tc>, window_params = [{transform_indices = @transform_0, window_bounds = array<i64: 16, 32>}, {pipeline_mode = #tpu.pipeline_mode<synchronous>, transform_indices = @transform_1, window_bounds = array<i64: 32, 1>}, {transform_indices = @transform_2, window_bounds = array<i64: 1, 1>}, {transform_indices = @transform_3, window_bounds = array<i64: 1, 1, 16>}]} {
    %c0 = arith.constant 0 : index
    %c0_0 = arith.constant 0 : index
    %0 = vector.load %arg1[%c0, %c0_0] : memref<16x32xf32, #tpu.memory_space<vmem>>, vector<16x32xf32>
    %c0_1 = arith.constant 0 : index
    %c0_2 = arith.constant 0 : index
    %1 = vector.load %arg2[%c0_1, %c0_2] : memref<32x1xf32, #tpu.memory_space<vmem>>, vector<32x1xf32>
    %cst = arith.constant dense<0.000000e+00> : vector<16x1xf32>
    %2 = tpu.matmul %0, %1, %cst {dimension_numbers = #tpu.dot_dimension_numbers<[1], [0], [0], [1], [0, 0, 1, 1], [], []>, precision = #tpu.contract_precision<fp32>} : vector<16x32xf32>, vector<32x1xf32>, vector<16x1xf32> -> vector<16x1xf32>
    %c0_3 = arith.constant 0 : index
    %c0_4 = arith.constant 0 : index
    %3 = memref.load %arg3[%c0_3, %c0_4] : memref<1x1xf32, #tpu.memory_space<smem>>
    %4 = vector.broadcast %3 : f32 to vector<16x1xf32>
    %5 = arith.addf %2, %4 : vector<16x1xf32>
    %6 = arith.negf %5 : vector<16x1xf32>
    %7 = math.exp %6 : vector<16x1xf32>
    %cst_5 = arith.constant 1.000000e+00 : f32
    %8 = vector.broadcast %cst_5 : f32 to vector<16x1xf32>
    %9 = arith.addf %8, %7 : vector<16x1xf32>
    %10 = arith.divf %8, %9 : vector<16x1xf32>
    %11 = tpu.transpose %10, [1, 0] : vector<16x1xf32> -> vector<1x16xf32>
    %c0_6 = arith.constant 0 : index
    %c0_7 = arith.constant 0 : index
    %c0_8 = arith.constant 0 : index
    %12 = vector.load %arg4[%c0_6, %c0_7, %c0_8] : memref<1x1x16xf32, #tpu.memory_space<vmem>>, vector<1x1x16xf32>
    %13 = vector.shape_cast %12 : vector<1x1x16xf32> to vector<1x16xf32>
    %14 = vector.shape_cast %11 : vector<1x16xf32> to vector<1x1x16xf32>
    tpu.vector_store %arg4[%c0_6, %c0_7, %c0_8], %14 {strides = array<i32>} : memref<1x1x16xf32, #tpu.memory_space<vmem>>, vector<1x1x16xf32>,
    return
  }
  func.func @transform_0(%arg0: i32) -> (i32, i32) {
    %c0_i32 = arith.constant 0 : i32
    %c0_i32_0 = arith.constant 0 : i32
    return %arg0, %c0_i32 : i32, i32
  }
  func.func @transform_1(%arg0: i32) -> (i32, i32) {
    %c0_i32 = arith.constant 0 : i32
    %c0_i32_0 = arith.constant 0 : i32
    %c0_i32_1 = arith.constant 0 : i32
    return %c0_i32, %c0_i32_0 : i32, i32
  }
  func.func @transform_2(%arg0: i32) -> (i32, i32) {
    %c0_i32 = arith.constant 0 : i32
    %c0_i32_0 = arith.constant 0 : i32
    %c0_i32_1 = arith.constant 0 : i32
    return %c0_i32, %c0_i32_0 : i32, i32
  }
  func.func @transform_3(%arg0: i32) -> (i32, i32, i32) {
    %c0_i32 = arith.constant 0 : i32
    %c0_i32_0 = arith.constant 0 : i32
    %c0_i32_1 = arith.constant 0 : i32
    return %arg0, %c0_i32, %c0_i32_0 : i32, i32, i32
  }
}

module attributes {stable_mosaic.version = 11 : i64} {
  func.func @_nlr_kernel_row(%arg0: i32, %arg1: memref<16x32xf32, #tpu.memory_space<vmem>>, %arg2: memref<32x1xf32, #tpu.memory_space<vmem>>, %arg3: memref<1x1xf32, #tpu.memory_space<smem>>, %arg4: memref<1x1x16xf32, #tpu.memory_space<vmem>>) attributes {dimension_semantics = [#tpu.dimension_semantics<parallel>], iteration_bounds = array<i64: 1>, scalar_prefetch = 0 : i64, scratch_operands = 0 : i64, tpu.core_type = #tpu.core_type<tc>, window_params = [{transform_indices = @transform_0, window_bounds = array<i64: 16, 32>}, {pipeline_mode = #tpu.pipeline_mode<synchronous>, transform_indices = @transform_1, window_bounds = array<i64: 32, 1>}, {transform_indices = @transform_2, window_bounds = array<i64: 1, 1>}, {transform_indices = @transform_3, window_bounds = array<i64: 1, 1, 16>}]} {
    %c0 = arith.constant 0 : index
    %c0_0 = arith.constant 0 : index
    %0 = vector.load %arg1[%c0, %c0_0] : memref<16x32xf32, #tpu.memory_space<vmem>>, vector<16x32xf32>
    %c0_1 = arith.constant 0 : index
    %c0_2 = arith.constant 0 : index
    %1 = vector.load %arg2[%c0_1, %c0_2] : memref<32x1xf32, #tpu.memory_space<vmem>>, vector<32x1xf32>
    %cst = arith.constant dense<0.000000e+00> : vector<16x1xf32>
    %2 = tpu.matmul %0, %1, %cst {dimension_numbers = #tpu.dot_dimension_numbers<[1], [0], [0], [1], [0, 0, 1, 1], [], []>} : vector<16x32xf32>, vector<32x1xf32>, vector<16x1xf32> -> vector<16x1xf32>
    %c0_3 = arith.constant 0 : index
    %c0_4 = arith.constant 0 : index
    %3 = memref.load %arg3[%c0_3, %c0_4] : memref<1x1xf32, #tpu.memory_space<smem>>
    %4 = vector.broadcast %3 : f32 to vector<16x1xf32>
    %5 = arith.addf %2, %4 : vector<16x1xf32>
    %6 = arith.negf %5 : vector<16x1xf32>
    %7 = math.exp %6 : vector<16x1xf32>
    %cst_5 = arith.constant 1.000000e+00 : f32
    %8 = vector.broadcast %cst_5 : f32 to vector<16x1xf32>
    %9 = arith.addf %8, %7 : vector<16x1xf32>
    %10 = arith.divf %8, %9 : vector<16x1xf32>
    %11 = tpu.transpose %10, [1, 0] : vector<16x1xf32> -> vector<1x16xf32>
    %c0_6 = arith.constant 0 : index
    %c0_7 = arith.constant 0 : index
    %c0_8 = arith.constant 0 : index
    %12 = vector.load %arg4[%c0_6, %c0_7, %c0_8] : memref<1x1x16xf32, #tpu.memory_space<vmem>>, vector<1x1x16xf32>
    %13 = vector.shape_cast %12 : vector<1x1x16xf32> to vector<1x16xf32>
    %14 = vector.shape_cast %11 : vector<1x16xf32> to vector<1x1x16xf32>
    tpu.vector_store %arg4[%c0_6, %c0_7, %c0_8], %14 {strides = array<i32>} : memref<1x1x16xf32, #tpu.memory_space<vmem>>, vector<1x1x16xf32>,
    return
  }
  func.func @transform_0(%arg0: i32) -> (i32, i32) {
    %c0_i32 = arith.constant 0 : i32
    %c0_i32_0 = arith.constant 0 : i32
    return %arg0, %c0_i32 : i32, i32
  }
  func.func @transform_1(%arg0: i32) -> (i32, i32) {
    %c0_i32 = arith.constant 0 : i32
    %c0_i32_0 = arith.constant 0 : i32
    %c0_i32_1 = arith.constant 0 : i32
    return %c0_i32, %c0_i32_0 : i32, i32
  }
  func.func @transform_2(%arg0: i32) -> (i32, i32) {
    %c0_i32 = arith.constant 0 : i32
    %c0_i32_0 = arith.constant 0 : i32
    %c0_i32_1 = arith.constant 0 : i32
    return %c0_i32, %c0_i32_0 : i32, i32
  }
  func.func @transform_3(%arg0: i32) -> (i32, i32, i32) {
    %c0_i32 = arith.constant 0 : i32
    %c0_i32_0 = arith.constant 0 : i32
    %c0_i32_1 = arith.constant 0 : i32
    return %arg0, %c0_i32, %c0_i32_0 : i32, i32, i32
  }
}

module attributes {stable_mosaic.version = 11 : i64} {
  func.func @_nlr_kernel_col(%arg0: i32, %arg1: memref<16x32xf32, #tpu.memory_space<vmem>>, %arg2: memref<32x1xf32, #tpu.memory_space<vmem>>, %arg3: memref<1x1xf32, #tpu.memory_space<smem>>, %arg4: memref<16x1xf32, #tpu.memory_space<vmem>>) attributes {dimension_semantics = [#tpu.dimension_semantics<parallel>], iteration_bounds = array<i64: 1>, scalar_prefetch = 0 : i64, scratch_operands = 0 : i64, tpu.core_type = #tpu.core_type<tc>, window_params = [{transform_indices = @transform_0, window_bounds = array<i64: 16, 32>}, {pipeline_mode = #tpu.pipeline_mode<synchronous>, transform_indices = @transform_1, window_bounds = array<i64: 32, 1>}, {transform_indices = @transform_2, window_bounds = array<i64: 1, 1>}, {transform_indices = @transform_3, window_bounds = array<i64: 16, 1>}]} {
    %c0 = arith.constant 0 : index
    %c0_0 = arith.constant 0 : index
    %0 = vector.load %arg1[%c0, %c0_0] : memref<16x32xf32, #tpu.memory_space<vmem>>, vector<16x32xf32>
    %c0_1 = arith.constant 0 : index
    %c0_2 = arith.constant 0 : index
    %1 = vector.load %arg2[%c0_1, %c0_2] : memref<32x1xf32, #tpu.memory_space<vmem>>, vector<32x1xf32>
    %cst = arith.constant dense<0.000000e+00> : vector<16x1xf32>
    %2 = tpu.matmul %0, %1, %cst {dimension_numbers = #tpu.dot_dimension_numbers<[1], [0], [0], [1], [0, 0, 1, 1], [], []>, precision = #tpu.contract_precision<fp32>} : vector<16x32xf32>, vector<32x1xf32>, vector<16x1xf32> -> vector<16x1xf32>
    %c0_3 = arith.constant 0 : index
    %c0_4 = arith.constant 0 : index
    %3 = memref.load %arg3[%c0_3, %c0_4] : memref<1x1xf32, #tpu.memory_space<smem>>
    %4 = vector.broadcast %3 : f32 to vector<16x1xf32>
    %5 = arith.addf %2, %4 : vector<16x1xf32>
    %6 = arith.negf %5 : vector<16x1xf32>
    %7 = math.exp %6 : vector<16x1xf32>
    %cst_5 = arith.constant 1.000000e+00 : f32
    %8 = vector.broadcast %cst_5 : f32 to vector<16x1xf32>
    %9 = arith.addf %8, %7 : vector<16x1xf32>
    %10 = arith.divf %8, %9 : vector<16x1xf32>
    %c0_6 = arith.constant 0 : index
    %c0_7 = arith.constant 0 : index
    %11 = vector.load %arg4[%c0_6, %c0_7] : memref<16x1xf32, #tpu.memory_space<vmem>>, vector<16x1xf32>
    tpu.vector_store %arg4[%c0_6, %c0_7], %10 {strides = array<i32>} : memref<16x1xf32, #tpu.memory_space<vmem>>, vector<16x1xf32>,
    return
  }
  func.func @transform_0(%arg0: i32) -> (i32, i32) {
    %c0_i32 = arith.constant 0 : i32
    %c0_i32_0 = arith.constant 0 : i32
    return %arg0, %c0_i32 : i32, i32
  }
  func.func @transform_1(%arg0: i32) -> (i32, i32) {
    %c0_i32 = arith.constant 0 : i32
    %c0_i32_0 = arith.constant 0 : i32
    %c0_i32_1 = arith.constant 0 : i32
    return %c0_i32, %c0_i32_0 : i32, i32
  }
  func.func @transform_2(%arg0: i32) -> (i32, i32) {
    %c0_i32 = arith.constant 0 : i32
    %c0_i32_0 = arith.constant 0 : i32
    %c0_i32_1 = arith.constant 0 : i32
    return %c0_i32, %c0_i32_0 : i32, i32
  }
  func.func @transform_3(%arg0: i32) -> (i32, i32) {
    %c0_i32 = arith.constant 0 : i32
    %c0_i32_0 = arith.constant 0 : i32
    return %arg0, %c0_i32 : i32, i32
  }
}

module attributes {stable_mosaic.version = 11 : i64} {
  func.func @_nlr_kernel_col(%arg0: i32, %arg1: memref<16x32xf32, #tpu.memory_space<vmem>>, %arg2: memref<32x1xf32, #tpu.memory_space<vmem>>, %arg3: memref<1x1xf32, #tpu.memory_space<smem>>, %arg4: memref<16x1xf32, #tpu.memory_space<vmem>>) attributes {dimension_semantics = [#tpu.dimension_semantics<parallel>], iteration_bounds = array<i64: 1>, scalar_prefetch = 0 : i64, scratch_operands = 0 : i64, tpu.core_type = #tpu.core_type<tc>, window_params = [{transform_indices = @transform_0, window_bounds = array<i64: 16, 32>}, {pipeline_mode = #tpu.pipeline_mode<synchronous>, transform_indices = @transform_1, window_bounds = array<i64: 32, 1>}, {transform_indices = @transform_2, window_bounds = array<i64: 1, 1>}, {transform_indices = @transform_3, window_bounds = array<i64: 16, 1>}]} {
    %c0 = arith.constant 0 : index
    %c0_0 = arith.constant 0 : index
    %0 = vector.load %arg1[%c0, %c0_0] : memref<16x32xf32, #tpu.memory_space<vmem>>, vector<16x32xf32>
    %c0_1 = arith.constant 0 : index
    %c0_2 = arith.constant 0 : index
    %1 = vector.load %arg2[%c0_1, %c0_2] : memref<32x1xf32, #tpu.memory_space<vmem>>, vector<32x1xf32>
    %cst = arith.constant dense<0.000000e+00> : vector<16x1xf32>
    %2 = tpu.matmul %0, %1, %cst {dimension_numbers = #tpu.dot_dimension_numbers<[1], [0], [0], [1], [0, 0, 1, 1], [], []>} : vector<16x32xf32>, vector<32x1xf32>, vector<16x1xf32> -> vector<16x1xf32>
    %c0_3 = arith.constant 0 : index
    %c0_4 = arith.constant 0 : index
    %3 = memref.load %arg3[%c0_3, %c0_4] : memref<1x1xf32, #tpu.memory_space<smem>>
    %4 = vector.broadcast %3 : f32 to vector<16x1xf32>
    %5 = arith.addf %2, %4 : vector<16x1xf32>
    %6 = arith.negf %5 : vector<16x1xf32>
    %7 = math.exp %6 : vector<16x1xf32>
    %cst_5 = arith.constant 1.000000e+00 : f32
    %8 = vector.broadcast %cst_5 : f32 to vector<16x1xf32>
    %9 = arith.addf %8, %7 : vector<16x1xf32>
    %10 = arith.divf %8, %9 : vector<16x1xf32>
    %c0_6 = arith.constant 0 : index
    %c0_7 = arith.constant 0 : index
    %11 = vector.load %arg4[%c0_6, %c0_7] : memref<16x1xf32, #tpu.memory_space<vmem>>, vector<16x1xf32>
    tpu.vector_store %arg4[%c0_6, %c0_7], %10 {strides = array<i32>} : memref<16x1xf32, #tpu.memory_space<vmem>>, vector<16x1xf32>,
    return
  }
  func.func @transform_0(%arg0: i32) -> (i32, i32) {
    %c0_i32 = arith.constant 0 : i32
    %c0_i32_0 = arith.constant 0 : i32
    return %arg0, %c0_i32 : i32, i32
  }
  func.func @transform_1(%arg0: i32) -> (i32, i32) {
    %c0_i32 = arith.constant 0 : i32
    %c0_i32_0 = arith.constant 0 : i32
    %c0_i32_1 = arith.constant 0 : i32
    return %c0_i32, %c0_i32_0 : i32, i32
  }
  func.func @transform_2(%arg0: i32) -> (i32, i32) {
    %c0_i32 = arith.constant 0 : i32
    %c0_i32_0 = arith.constant 0 : i32
    %c0_i32_1 = arith.constant 0 : i32
    return %c0_i32, %c0_i32_0 : i32, i32
  }
  func.func @transform_3(%arg0: i32) -> (i32, i32) {
    %c0_i32 = arith.constant 0 : i32
    %c0_i32_0 = arith.constant 0 : i32
    return %arg0, %c0_i32 : i32, i32
  }
}

</mosaic_0001>

<bundles_post_ra>
// kernel: tpu_custom_call.1
= control target key start
LH: loop header
LB: loop body
LE: loop exit
PB: predicated region body
PF: predicated region fallthrough
CT: control target
= control target key end

     0   :  { %vm24_vm0 = vcmask 261120   ;;  %s883_s0 = inlined_call_operand.vmem [shape: f32[16,32], index: 0, kind: input, shape index: {}]   ;;  %s884_s1 = inlined_call_operand.vmem [shape: f32[32,1], index: 1, kind: input, shape index: {}]   ;;  %s885_s2 = inlined_call_operand.<no memory space> [shape: f32[1,1], index: 2, kind: input, shape index: {}]   ;;  %s886_s3 = inlined_call_operand.hbm [shape: f32[1,1,16], index: 3, kind: output, shape index: {}]  }
   0x1   :  { %v18_v0 = vld [vmem:[%s884_s1] sm:$0xff]  ;;  %v19_v1 = vld [vmem:[%s884_s1 + $0x8] sm:$0xff]  ;;  %v20_v2 = vld [vmem:[%s884_s1 + $0x10] sm:$0xff] }
   0x2   :  { %v32_v3 = vand.u32 4294901760, %v18_v0  ;;  %v35_v4 = vand.u32 4294901760, %v19_v1  ;;  %v21_v5 = vld [vmem:[%s884_s1 + $0x18] sm:$0xff]  ;;  %v38_v6 = vand.u32 4294901760, %v20_v2  ;;  %v16_v7 = vld [vmem:[%s883_s0] sm:$0xff]  ;;  %v17_v8 = vld [vmem:[%s883_s0 + $0x8] sm:$0xff] }
   0x3   :  { %v41_v9 = vand.u32 4294901760, %v21_v5  ;;  %v26_v10 = vsel %vm24_vm0, %v16_v7, 0  ;;  %v29_v11 = vsel %vm24_vm0, %v17_v8, 0 }
   0x4   :  { %9 = vsyncpa [#allocation4], 0  ;;  %v723_v12 = vpack.c.bf16 %v35_v4, %v32_v3  ;;  %v856_v13 = vand.u32 4294901760, %v26_v10  ;;  %v858_v14 = vand.u32 4294901760, %v29_v11  ;;  %v122_v15 = vsub.f32 %v18_v0, %v32_v3 }
   0x5   :  { %v727_v16 = vpack.c.bf16 %v41_v9, %v38_v6  ;;  %v129_v17 = vsub.f32 %v19_v1, %v35_v4  ;;  %v136_v18 = vsub.f32 %v20_v2, %v38_v6  ;;  %v143_v19 = vsub.f32 %v21_v5, %v41_v9 }
   0x6   :  { %724 = vmatprep.subr.bf16.mxu1 %v723_v12  ;;  %748 = vmatprep.subr.bf16.mxu0 %v723_v12  ;;  %v101_v20 = vsub.f32 %v26_v10, %v856_v13  ;;  %v111_v21 = vsub.f32 %v29_v11, %v858_v14  ;;  %v123_v22 = vand.u32 4294901760, %v122_v15  ;;  %v23_v46 = vstv %s885_s2  ;;  %s817_s2 = smov [#allocation3]  }
   0x7   :  { %726 = vmatpush3.bf16.msra.mxu1 %v723_v12  ;;  %750 = vmatpush3.bf16.msra.mxu0 %v723_v12  ;;  %v130_v23 = vand.u32 4294901760, %v129_v17  ;;  %v137_v24 = vand.u32 4294901760, %v136_v18  ;;  %v144_v25 = vand.u32 4294901760, %v143_v19  ;;  %v739_v44 = vpack.c.bf16 %v129_v17, %v122_v15  ;;  %s611_s24 = sshll.u32 %s817_s2, 4  ;;  %s612_s24 = int_to_ptr.vmem [resolvable:$true] %s611_s24 }
   0x8   :  { %728 = vmatprep.subr.bf16.mxu1 %v727_v16  ;;  %752 = vmatprep.subr.bf16.mxu0 %v727_v16  ;;  %v102_v26 = vand.u32 4294901760, %v101_v20  ;;  %v112_v27 = vand.u32 4294901760, %v111_v21  ;;  %v124_v28 = vsub.f32 %v122_v15, %v123_v22  ;;  %v743_v45 = vpack.c.bf16 %v143_v19, %v136_v18  ;;  %s793_s25 = scalar_lea.vmem %s612_s24, 16  ;;  %s797_s26 = scalar_lea.vmem %s612_s24, 32 }
   0x9   :  { %v131_v29 = vsub.f32 %v129_v17, %v130_v23  ;;  %v755_v30 = vpack.c.bf16 %v130_v23, %v123_v22  ;;  %v138_v31 = vsub.f32 %v136_v18, %v137_v24  ;;  %v145_v32 = vsub.f32 %v143_v19, %v144_v25  ;;  %p794_p0 = scmp.ne.s32.totalorder %s612_s24, %s793_s25  ;;  %p798_p1 = scmp.lt.s32.totalorder %s612_s24, %s612_s24 }
   0xa   :  { %v103_v33 = vsub.f32 %v101_v20, %v102_v26  ;;  %698 = vmatprep.mubr.f32.mxu0 %v102_v26  ;;  %v113_v34 = vsub.f32 %v111_v21, %v112_v27  ;;  %v125_v35 = vand.u32 4294901760, %v124_v28  ;;  %v759_v43 = vpack.c.bf16 %v144_v25, %v137_v24  ;;  %p799_p2 = scmp.lt.s32.totalorder %s797_s26, %s793_s25 }
   0xb   :  { %730 = vmatpush3.bf16.msra.mxu1 %v727_v16  ;;  %754 = vmatpush3.bf16.msra.mxu0 %v727_v16  ;;  %v132_v36 = vand.u32 4294901760, %v131_v29  ;;  %v139_v37 = vand.u32 4294901760, %v138_v31  ;;  %v146_v38 = vand.u32 4294901760, %v145_v32  ;;  %vm603_vm1 = vcmask 122880  }
   0xc   :  { %v104_v39 = vand.u32 4294901760, %v103_v33  ;;  %v114_v40 = vand.u32 4294901760, %v113_v34  ;;  %756 = vmatprep.subr.bf16.mxu0 %v755_v30  ;;  %p800_p3 = por %p799_p2, %p798_p1 }
   0xd   :  { %v731_v41 = vpack.c.bf16 %v132_v36, %v125_v35  ;;  %v735_v42 = vpack.c.bf16 %v146_v38, %v139_v37 }
   0xe   :  { %665 = vmatprep.mubr.f32.mxu1 %v104_v39  ;;  %699 = vmatmul.mubr.f32.vlgmr.msra.gmra.mrb[0].mxu0 %v112_v27  ;;  %p801_p4 = pnand %p800_p3, %p794_p0 }
   0xf   :  { %666 = vmatmul.mubr.f32.vlgmr.msra.gmra.mrb[0].mxu1 %v114_v40  ;;  %732 = vmatprep.subr.bf16.mxu1 %v731_v41 }
  0x10   :  { %734 = vmatpush3.bf16.msra.mxu1 %v731_v41  ;;  %758 = vmatpush3.bf16.msra.mxu0 %v755_v30 }
  0x11   :  { %736 = vmatprep.subr.bf16.mxu1 %v735_v42  ;;  %760 = vmatprep.subr.bf16.mxu0 %v759_v43 }
  0x12   :  { %676 = vmatprep.mubr.f32.mxu1 %v856_v13  ;;  %709 = vmatprep.mubr.f32.mxu0 %v856_v13 }
  0x14   :  { %738 = vmatpush3.bf16.msra.mxu1 %v735_v42  ;;  %762 = vmatpush3.bf16.msra.mxu0 %v759_v43 }
  0x15   :  { %740 = vmatprep.subr.bf16.mxu1 %v739_v44  ;;  %764 = vmatprep.subr.bf16.mxu0 %v723_v12 }
  0x17   :  { %677 = vmatmul.mubr.f32.vlgmr.msra.gmra.mrb[0].mxu1 %v858_v14  ;;  %710 = vmatmul.mubr.f32.vlgmr.msra.gmra.mrb[0].mxu0 %v858_v14 }
  0x18   :  { %742 = vmatpush3.bf16.msra.mxu1 %v739_v44  ;;  %766 = vmatpush3.bf16.msra.mxu0 %v723_v12 }
  0x19   :  { %744 = vmatprep.subr.bf16.mxu1 %v743_v45  ;;  %768 = vmatprep.subr.bf16.mxu0 %v727_v16 }
  0x1a   :  { %687 = vmatprep.mubr.f32.mxu1 %v101_v20  ;;  %720 = vmatprep.mubr.f32.mxu0 %v856_v13 }
  0x1c   :  { %746 = vmatpush3.bf16.msra.mxu1 %v743_v45  ;;  %770 = vmatpush3.bf16.msra.mxu0 %v727_v16 }
  0x1f   :  { %688 = vmatmul.mubr.f32.vlgmr.msra.gmra.mrb[0].mxu1 %v111_v21  ;;  %721 = vmatmul.mubr.f32.vlgmr.msra.gmra.mrb[0].mxu0 %v858_v14 }
  0xf2   :  { %v689_v47 = vpop.f32.mrb[0].mxu1  ;;  %v722_v48 = vpop.f32.mrb[0].mxu0 }
  0xf3   :  { %v771_v49 = vadd.f32 %v689_v47, %v23_v46  ;;  %v293_v50 = vpop.f32.mrb[1].mxu1  ;;  %v549_v51 = vpop.f32.mrb[1].mxu0 }
  0xf4   :  { %v773_v52 = vadd.f32 %v293_v50, %v23_v46 }
  0xf5   :  { %v772_v53 = vadd.f32 %v771_v49, %v722_v48 }
  0xf6   :  { %v774_v54 = vadd.f32 %v773_v52, %v549_v51 }
  0xf7   :  { %v620_v55 = vmul.f32 -1.442695, %v772_v53 }
  0xf8   :  { %v619_v56 = vmul.f32 -1.442695, %v774_v54 }
  0xf9   :  { %785 = vpow2.f32 %v620_v55 }
  0xfa   :  { %787 = vpow2.f32 %v619_v56 }
 0x103   :  { %v786_v57 = vpop.eup %785 }
 0x104   :  { %v788_v58 = vpop.eup %787  ;;  %v566_v60 = vadd.f32 1.0, %v786_v57 }
 0x105   :  { %v565_v59 = vadd.f32 1.0, %v788_v58 }
 0x107   :  { %789 = vrcp.f32 %v565_v59 }
 0x108   :  { %791 = vrcp.f32 %v566_v60 }
 0x111   :  { %v790_v61 = vpop.eup %789 }
 0x112   :  { %571 = vxpose.xlu0.b32.start [1/2] (short) (narrow) %v790_v61, 8  ;;  %v792_v62 = vpop.eup %791 }
 0x116   :  { %572 = vxpose.xlu0.b32.end [2/2] (short) (narrow) %v792_v62, 8 }
 0x192   :  { %v587_v63 = vpop.trf.xlu0 }
 0x193   :  { %604 = vst.msk [vmem:[#allocation3] sm:$0x1] %vm603_vm1, %v587_v63 }
 0x194   :  { %804 = shalt.err (!%p801_p4)
}
 0x195   :  { %s805_s29 = scalar_lea.hbm %s886_s3, 16 }
 0x196   :  { %p806_p5 = scmp.ne.s32.totalorder %s886_s3, %s805_s29  ;;  %p809_p6 = scmp.lt.u32.totalorder %s805_s29, %s886_s3 }
 0x198   :  { %p811_p7 = pnand %p809_p6, %p806_p5 }
 0x19a   :  { %814 = shalt.err (!%p811_p7)
}
 0x19b   :  { %614 = dma.vmem_to_hbm [thread:$0]  %s612_s24, 16, %s886_s3, [#allocation4]  }
 0x19c   :  { %815 = dma.done.wait [#allocation4], 16  }
 0x19d   :  { %816 = vsyncadd [#allocation4], 4294967280 }
 0x19e   :  { %618 = vsyncpa [#allocation4], 1 }

// kernel: tpu_custom_call.1
= control target key start
LH: loop header
LB: loop body
LE: loop exit
PB: predicated region body
PF: predicated region fallthrough
CT: control target
= control target key end

     0   :  { %vm24_vm0 = vcmask 261120   ;;  %s283_s0 = inlined_call_operand.vmem [shape: f32[16,32], index: 0, kind: input, shape index: {}]   ;;  %s284_s1 = inlined_call_operand.vmem [shape: f32[32,1], index: 1, kind: input, shape index: {}]   ;;  %s285_s2 = inlined_call_operand.<no memory space> [shape: f32[1,1], index: 2, kind: input, shape index: {}]   ;;  %s286_s3 = inlined_call_operand.hbm [shape: f32[1,1,16], index: 3, kind: output, shape index: {}]  }
   0x1   :  { %v18_v0 = vld [vmem:[%s284_s1] sm:$0xff]  ;;  %v19_v1 = vld [vmem:[%s284_s1 + $0x8] sm:$0xff]  ;;  %v20_v2 = vld [vmem:[%s284_s1 + $0x10] sm:$0xff] }
   0x2   :  { %v187_v3 = vpack.c.bf16 %v19_v1, %v18_v0  ;;  %v21_v4 = vld [vmem:[%s284_s1 + $0x18] sm:$0xff]  ;;  %v16_v5 = vld [vmem:[%s283_s0] sm:$0xff] }
   0x3   :  { %v191_v6 = vpack.c.bf16 %v21_v4, %v20_v2  ;;  %184 = vmatprep.mubr.msk.f32.mxu0 %vm24_vm0, %v16_v5 }
   0x4   :  { %9 = vsyncpa [#allocation4], 0  ;;  %188 = vmatprep.subr.bf16.mxu0 %v187_v3  ;;  %v17_v7 = vld [vmem:[%s283_s0 + $0x8] sm:$0xff]  ;;  %v23_v8 = vstv %s285_s2  ;;  %s229_s0 = smov [#allocation3]   ;;  %vm150_vm1 = vcmask 122880  }
   0x5   :  { %190 = vmatpush3.bf16.msra.mxu0 %v187_v3  ;;  %s158_s1 = sshll.u32 %s229_s0, 4  ;;  %s159_s1 = int_to_ptr.vmem [resolvable:$true] %s158_s1 }
   0x6   :  { %192 = vmatprep.subr.bf16.mxu0 %v191_v6  ;;  %s205_s2 = scalar_lea.vmem %s159_s1, 16  ;;  %s209_s26 = scalar_lea.vmem %s159_s1, 32 }
   0x7   :  { %p206_p0 = scmp.ne.s32.totalorder %s159_s1, %s205_s2  ;;  %p210_p1 = scmp.lt.s32.totalorder %s159_s1, %s159_s1 }
   0x8   :  { %p211_p2 = scmp.lt.s32.totalorder %s209_s26, %s205_s2 }
   0x9   :  { %194 = vmatpush3.bf16.msra.mxu0 %v191_v6 }
   0xa   :  { %p212_p3 = por %p211_p2, %p210_p1 }
   0xc   :  { %185 = vmatmul.mubr.msk.f32.vlgmr.msra.gmra.mrb[0].mxu0 %vm24_vm0, %v17_v7  ;;  %p213_p4 = pnand %p212_p3, %p206_p0 }
  0xdf   :  { %v186_v9 = vpop.f32.mrb[0].mxu0 }
  0xe0   :  { %v103_v10 = vadd.f32 %v186_v9, %v23_v8  ;;  %v97_v11 = vpop.f32.mrb[1].mxu0 }
  0xe1   :  { %v98_v12 = vadd.f32 %v97_v11, %v23_v8 }
  0xe2   :  { %v169_v13 = vmul.f32 -1.442695, %v103_v10 }
  0xe3   :  { %v168_v14 = vmul.f32 -1.442695, %v98_v12 }
  0xe4   :  { %197 = vpow2.f32 %v169_v13 }
  0xe5   :  { %199 = vpow2.f32 %v168_v14 }
  0xee   :  { %v198_v15 = vpop.eup %197 }
  0xef   :  { %v200_v16 = vpop.eup %199  ;;  %v113_v18 = vadd.f32 1.0, %v198_v15 }
  0xf0   :  { %v112_v17 = vadd.f32 1.0, %v200_v16 }
  0xf2   :  { %201 = vrcp.f32 %v112_v17 }
  0xf3   :  { %203 = vrcp.f32 %v113_v18 }
  0xfc   :  { %v202_v19 = vpop.eup %201 }
  0xfd   :  { %118 = vxpose.xlu0.b32.start [1/2] (short) (narrow) %v202_v19, 8  ;;  %v204_v20 = vpop.eup %203 }
 0x101   :  { %119 = vxpose.xlu0.b32.end [2/2] (short) (narrow) %v204_v20, 8 }
 0x17d   :  { %v134_v21 = vpop.trf.xlu0 }
 0x17e   :  { %151 = vst.msk [vmem:[#allocation3] sm:$0x1] %vm150_vm1, %v134_v21 }
 0x17f   :  { %216 = shalt.err (!%p213_p4)
}
 0x180   :  { %s217_s29 = scalar_lea.hbm %s286_s3, 16 }
 0x181   :  { %p218_p5 = scmp.ne.s32.totalorder %s286_s3, %s217_s29  ;;  %p221_p6 = scmp.lt.u32.totalorder %s217_s29, %s286_s3 }
 0x183   :  { %p223_p7 = pnand %p221_p6, %p218_p5 }
 0x185   :  { %226 = shalt.err (!%p223_p7)
}
 0x186   :  { %161 = dma.vmem_to_hbm [thread:$0]  %s159_s1, 16, %s286_s3, [#allocation4]  }
 0x187   :  { %227 = dma.done.wait [#allocation4], 16  }
 0x188   :  { %228 = vsyncadd [#allocation4], 4294967280 }
 0x189   :  { %165 = vsyncpa [#allocation4], 1 }

// kernel: tpu_custom_call.1
= control target key start
LH: loop header
LB: loop body
LE: loop exit
PB: predicated region body
PF: predicated region fallthrough
CT: control target
= control target key end

     0   :  { %vm23_vm0 = vcmask 261120   ;;  %vm570_vm1 = vcmask 7168   ;;  %s808_s1 = inlined_call_operand.vmem [shape: f32[32,1], index: 1, kind: input, shape index: {}]   ;;  %s809_s0 = inlined_call_operand.vmem [shape: f32[16,32], index: 0, kind: input, shape index: {}]   ;;  %s810_s2 = inlined_call_operand.<no memory space> [shape: f32[1,1], index: 2, kind: input, shape index: {}]   ;;  %s811_s3 = inlined_call_operand.vmem [shape: f32[16,1], index: 3, kind: output, shape index: {}]  }
   0x1   :  { %v17_v0 = vld [vmem:[%s808_s1] sm:$0xff]  ;;  %v18_v1 = vld [vmem:[%s808_s1 + $0x8] sm:$0xff]  ;;  %v19_v2 = vld [vmem:[%s808_s1 + $0x10] sm:$0xff]  ;;  %v22_v46 = vstv %s810_s2 }
   0x2   :  { %v31_v3 = vand.u32 4294901760, %v17_v0  ;;  %v34_v4 = vand.u32 4294901760, %v18_v1  ;;  %v20_v5 = vld [vmem:[%s808_s1 + $0x18] sm:$0xff]  ;;  %v37_v6 = vand.u32 4294901760, %v19_v2  ;;  %v15_v7 = vld [vmem:[%s809_s0] sm:$0xff]  ;;  %v16_v8 = vld [vmem:[%s809_s0 + $0x8] sm:$0xff] }
   0x3   :  { %v40_v9 = vand.u32 4294901760, %v20_v5  ;;  %v25_v10 = vsel %vm23_vm0, %v15_v7, 0  ;;  %v28_v11 = vsel %vm23_vm0, %v16_v8, 0 }
   0x4   :  { %v681_v12 = vpack.c.bf16 %v34_v4, %v31_v3  ;;  %v787_v13 = vand.u32 4294901760, %v25_v10  ;;  %v789_v14 = vand.u32 4294901760, %v28_v11  ;;  %v121_v15 = vsub.f32 %v17_v0, %v31_v3 }
   0x5   :  { %v685_v16 = vpack.c.bf16 %v40_v9, %v37_v6  ;;  %v128_v17 = vsub.f32 %v18_v1, %v34_v4  ;;  %v135_v18 = vsub.f32 %v19_v2, %v37_v6  ;;  %v142_v19 = vsub.f32 %v20_v5, %v40_v9 }
   0x6   :  { %682 = vmatprep.subr.bf16.mxu1 %v681_v12  ;;  %706 = vmatprep.subr.bf16.mxu0 %v681_v12  ;;  %v100_v20 = vsub.f32 %v25_v10, %v787_v13  ;;  %v110_v21 = vsub.f32 %v28_v11, %v789_v14  ;;  %v122_v22 = vand.u32 4294901760, %v121_v15 }
   0x7   :  { %684 = vmatpush3.bf16.msra.mxu1 %v681_v12  ;;  %708 = vmatpush3.bf16.msra.mxu0 %v681_v12  ;;  %v129_v23 = vand.u32 4294901760, %v128_v17  ;;  %v136_v24 = vand.u32 4294901760, %v135_v18  ;;  %v143_v25 = vand.u32 4294901760, %v142_v19  ;;  %v697_v44 = vpack.c.bf16 %v128_v17, %v121_v15 }
   0x8   :  { %686 = vmatprep.subr.bf16.mxu1 %v685_v16  ;;  %710 = vmatprep.subr.bf16.mxu0 %v685_v16  ;;  %v101_v26 = vand.u32 4294901760, %v100_v20  ;;  %v111_v27 = vand.u32 4294901760, %v110_v21  ;;  %v123_v28 = vsub.f32 %v121_v15, %v122_v22  ;;  %v701_v45 = vpack.c.bf16 %v142_v19, %v135_v18 }
   0x9   :  { %v130_v29 = vsub.f32 %v128_v17, %v129_v23  ;;  %v713_v30 = vpack.c.bf16 %v129_v23, %v122_v22  ;;  %v137_v31 = vsub.f32 %v135_v18, %v136_v24  ;;  %v144_v32 = vsub.f32 %v142_v19, %v143_v25 }
   0xa   :  { %v102_v33 = vsub.f32 %v100_v20, %v101_v26  ;;  %656 = vmatprep.mubr.f32.mxu0 %v101_v26  ;;  %v112_v34 = vsub.f32 %v110_v21, %v111_v27  ;;  %v124_v35 = vand.u32 4294901760, %v123_v28  ;;  %v717_v43 = vpack.c.bf16 %v143_v25, %v136_v24 }
   0xb   :  { %688 = vmatpush3.bf16.msra.mxu1 %v685_v16  ;;  %712 = vmatpush3.bf16.msra.mxu0 %v685_v16  ;;  %v131_v36 = vand.u32 4294901760, %v130_v29  ;;  %v138_v37 = vand.u32 4294901760, %v137_v31  ;;  %v145_v38 = vand.u32 4294901760, %v144_v32 }
   0xc   :  { %v103_v39 = vand.u32 4294901760, %v102_v33  ;;  %v113_v40 = vand.u32 4294901760, %v112_v34  ;;  %714 = vmatprep.subr.bf16.mxu0 %v713_v30 }
   0xd   :  { %v689_v41 = vpack.c.bf16 %v131_v36, %v124_v35  ;;  %v693_v42 = vpack.c.bf16 %v145_v38, %v138_v37 }
   0xe   :  { %623 = vmatprep.mubr.f32.mxu1 %v103_v39  ;;  %657 = vmatmul.mubr.f32.vlgmr.msra.gmra.mrb[0].mxu0 %v111_v27 }
   0xf   :  { %624 = vmatmul.mubr.f32.vlgmr.msra.gmra.mrb[0].mxu1 %v113_v40  ;;  %690 = vmatprep.subr.bf16.mxu1 %v689_v41 }
  0x10   :  { %692 = vmatpush3.bf16.msra.mxu1 %v689_v41  ;;  %716 = vmatpush3.bf16.msra.mxu0 %v713_v30 }
  0x11   :  { %694 = vmatprep.subr.bf16.mxu1 %v693_v42  ;;  %718 = vmatprep.subr.bf16.mxu0 %v717_v43 }
  0x12   :  { %634 = vmatprep.mubr.f32.mxu1 %v787_v13  ;;  %667 = vmatprep.mubr.f32.mxu0 %v787_v13 }
  0x14   :  { %696 = vmatpush3.bf16.msra.mxu1 %v693_v42  ;;  %720 = vmatpush3.bf16.msra.mxu0 %v717_v43 }
  0x15   :  { %698 = vmatprep.subr.bf16.mxu1 %v697_v44  ;;  %722 = vmatprep.subr.bf16.mxu0 %v681_v12 }
  0x17   :  { %635 = vmatmul.mubr.f32.vlgmr.msra.gmra.mrb[0].mxu1 %v789_v14  ;;  %668 = vmatmul.mubr.f32.vlgmr.msra.gmra.mrb[0].mxu0 %v789_v14 }
  0x18   :  { %700 = vmatpush3.bf16.msra.mxu1 %v697_v44  ;;  %724 = vmatpush3.bf16.msra.mxu0 %v681_v12 }
  0x19   :  { %702 = vmatprep.subr.bf16.mxu1 %v701_v45  ;;  %726 = vmatprep.subr.bf16.mxu0 %v685_v16 }
  0x1a   :  { %645 = vmatprep.mubr.f32.mxu1 %v100_v20  ;;  %678 = vmatprep.mubr.f32.mxu0 %v787_v13 }
  0x1c   :  { %704 = vmatpush3.bf16.msra.mxu1 %v701_v45  ;;  %728 = vmatpush3.bf16.msra.mxu0 %v685_v16 }
  0x1f   :  { %646 = vmatmul.mubr.f32.vlgmr.msra.gmra.mrb[0].mxu1 %v110_v21  ;;  %679 = vmatmul.mubr.f32.vlgmr.msra.gmra.mrb[0].mxu0 %v789_v14 }
  0xf2   :  { %v647_v47 = vpop.f32.mrb[0].mxu1  ;;  %v680_v48 = vpop.f32.mrb[0].mxu0 }
  0xf3   :  { %v729_v49 = vadd.f32 %v647_v47, %v22_v46  ;;  %v292_v50 = vpop.f32.mrb[1].mxu1  ;;  %v548_v51 = vpop.f32.mrb[1].mxu0 }
  0xf4   :  { %v731_v52 = vadd.f32 %v292_v50, %v22_v46 }
  0xf5   :  { %v730_v53 = vadd.f32 %v729_v49, %v680_v48 }
  0xf6   :  { %v732_v54 = vadd.f32 %v731_v52, %v548_v51 }
  0xf7   :  { %v578_v55 = vmul.f32 -1.442695, %v730_v53 }
  0xf8   :  { %v577_v56 = vmul.f32 -1.442695, %v732_v54 }
  0xf9   :  { %741 = vpow2.f32 %v578_v55 }
  0xfa   :  { %743 = vpow2.f32 %v577_v56 }
 0x103   :  { %v742_v57 = vpop.eup %741 }
 0x104   :  { %v744_v58 = vpop.eup %743  ;;  %v565_v59 = vadd.f32 1.0, %v742_v57 }
 0x105   :  { %v564_v60 = vadd.f32 1.0, %v744_v58 }
 0x106   :  { %745 = vrcp.f32 %v565_v59 }
 0x107   :  { %747 = vrcp.f32 %v564_v60 }
 0x110   :  { %v746_v61 = vpop.eup %745 }
 0x111   :  { %v748_v62 = vpop.eup %747  ;;  %572 = vst.msk [vmem:[%s811_s3 + $0x8] sm:$0xff] %vm570_vm1, %v746_v61 }
 0x112   :  { %571 = vst.msk [vmem:[%s811_s3] sm:$0xff] %vm570_vm1, %v748_v62 }

// kernel: tpu_custom_call.1
= control target key start
LH: loop header
LB: loop body
LE: loop exit
PB: predicated region body
PF: predicated region fallthrough
CT: control target
= control target key end

     0   :  { %vm23_vm0 = vcmask 261120   ;;  %vm117_vm1 = vcmask 7168   ;;  %s208_s1 = inlined_call_operand.vmem [shape: f32[32,1], index: 1, kind: input, shape index: {}]   ;;  %s209_s0 = inlined_call_operand.vmem [shape: f32[16,32], index: 0, kind: input, shape index: {}]   ;;  %s210_s2 = inlined_call_operand.<no memory space> [shape: f32[1,1], index: 2, kind: input, shape index: {}]   ;;  %s211_s3 = inlined_call_operand.vmem [shape: f32[16,1], index: 3, kind: output, shape index: {}]  }
   0x1   :  { %v17_v0 = vld [vmem:[%s208_s1] sm:$0xff]  ;;  %v18_v1 = vld [vmem:[%s208_s1 + $0x8] sm:$0xff]  ;;  %v19_v2 = vld [vmem:[%s208_s1 + $0x10] sm:$0xff]  ;;  %v22_v8 = vstv %s210_s2 }
   0x2   :  { %v145_v3 = vpack.c.bf16 %v18_v1, %v17_v0  ;;  %v20_v4 = vld [vmem:[%s208_s1 + $0x18] sm:$0xff]  ;;  %v15_v5 = vld [vmem:[%s209_s0] sm:$0xff]  ;;  %v16_v7 = vld [vmem:[%s209_s0 + $0x8] sm:$0xff] }
   0x3   :  { %v149_v6 = vpack.c.bf16 %v20_v4, %v19_v2  ;;  %142 = vmatprep.mubr.msk.f32.mxu0 %vm23_vm0, %v15_v5 }
   0x4   :  { %146 = vmatprep.subr.bf16.mxu0 %v145_v3 }
   0x5   :  { %148 = vmatpush3.bf16.msra.mxu0 %v145_v3 }
   0x6   :  { %150 = vmatprep.subr.bf16.mxu0 %v149_v6 }
   0x9   :  { %152 = vmatpush3.bf16.msra.mxu0 %v149_v6 }
   0xc   :  { %143 = vmatmul.mubr.msk.f32.vlgmr.msra.gmra.mrb[0].mxu0 %vm23_vm0, %v16_v7 }
  0xdf   :  { %v144_v9 = vpop.f32.mrb[0].mxu0 }
  0xe0   :  { %v102_v10 = vadd.f32 %v144_v9, %v22_v8  ;;  %v96_v11 = vpop.f32.mrb[1].mxu0 }
  0xe1   :  { %v97_v12 = vadd.f32 %v96_v11, %v22_v8 }
  0xe2   :  { %v127_v13 = vmul.f32 -1.442695, %v102_v10 }
  0xe3   :  { %v126_v14 = vmul.f32 -1.442695, %v97_v12 }
  0xe4   :  { %153 = vpow2.f32 %v127_v13 }
  0xe5   :  { %155 = vpow2.f32 %v126_v14 }
  0xee   :  { %v154_v15 = vpop.eup %153 }
  0xef   :  { %v156_v16 = vpop.eup %155  ;;  %v112_v17 = vadd.f32 1.0, %v154_v15 }
  0xf0   :  { %v111_v18 = vadd.f32 1.0, %v156_v16 }
  0xf1   :  { %157 = vrcp.f32 %v112_v17 }
  0xf2   :  { %159 = vrcp.f32 %v111_v18 }
  0xfb   :  { %v158_v19 = vpop.eup %157 }
  0xfc   :  { %v160_v20 = vpop.eup %159  ;;  %119 = vst.msk [vmem:[%s211_s3 + $0x8] sm:$0xff] %vm117_vm1, %v158_v19 }
  0xfd   :  { %118 = vst.msk [vmem:[%s211_s3] sm:$0xff] %vm117_vm1, %v160_v20 }

</bundles_post_ra>
